<compile_context>
chip_gen: v7x
topology: tpu7x:2x2x1
jax: 0.10.0
libtpu: 0.0.40
codegen_flags: <defaults>
</compile_context>

<pallas_src>
import jax
import jax.numpy as jnp
import numpy as np
from jax.experimental import pallas as pl
from jax.experimental.pallas import tpu as pltpu

# ---- configuration mirroring
# ProjectedAdaptiveLogSoftmax(n_token=160, d_embed=32, d_proj=32,
#                             cutoffs=[64, 128], div_val=2) ----
N_TOKEN = 160
D_EMBED = 32
D_PROJ = 32
CUTOFFS = [64, 128]
DIV_VAL = 2

CUTOFFS_EXT = CUTOFFS + [N_TOKEN]          # [64, 128, 160]
CUTOFF_ENDS = [0] + CUTOFFS_EXT            # [0, 64, 128, 160]
N_CLUSTERS = len(CUTOFFS_EXT) - 1          # 2
SHORTLIST = CUTOFFS_EXT[0]                 # 64
N_SEG = len(CUTOFFS_EXT)                   # 3 (head + 2 tail clusters)
SEG_REAL = [SHORTLIST + N_CLUSTERS] + [CUTOFF_ENDS[i + 1] - CUTOFF_ENDS[i]
                                       for i in range(1, N_SEG)]   # [66, 64, 32]
SEG_PAD = 128                              # one 128-lane group per segment
TOTAL_PAD = N_SEG * SEG_PAD                # 384
NEG_PAD = -1e30                            # finite "minus infinity" pad bias
assert all(s <= SEG_PAD for s in SEG_REAL)

_COMPILER_PARAMS = pltpu.CompilerParams(
    dimension_semantics=("parallel",),
    vmem_limit_bytes=48 * 1024 * 1024,     # headroom; v7x has 64 MiB physical
)


def _round_up(x, m):
    return ((x + m - 1) // m) * m


# --------------------------------------------------------------------------
# Kernels
# --------------------------------------------------------------------------
def adaptive_logsoftmax_kernel(h_ref, w_ref, b_ref, o_ref):
    """labels=None path: full [tile, N_TOKEN] log-probabilities.

    One [tile, D_PROJ] x [D_PROJ, TOTAL_PAD] MXU matmul; per-segment
    log-softmax over full 128-lane-aligned groups; three sliced stores.
    """
    logits = jnp.dot(h_ref[...], w_ref[...],
                     preferred_element_type=jnp.float32) + b_ref[...]

    # Per-segment numerically-stable log-softmax.  Each slice is a whole
    # 128-lane group; pad columns are exactly NEG_PAD so they never win the
    # max and contribute exp(...) == 0 to the sum.
    lp = []
    for g in range(N_SEG):
        s = logits[:, g * SEG_PAD:(g + 1) * SEG_PAD]
        m = jnp.max(s, axis=-1, keepdims=True)
        z = s - m
        lp.append(z - jnp.log(jnp.sum(jnp.exp(z), axis=-1, keepdims=True)))

    od = o_ref.dtype
    # Shortlist tokens come straight from the head softmax.
    o_ref[:, 0:SHORTLIST] = lp[0][:, 0:SHORTLIST].astype(od)
    # Tail clusters: out[:, l:r] = head_lp[:, cluster_col] + tail_lp.
    for i in range(1, N_SEG):
        l, r = CUTOFF_ENDS[i], CUTOFF_ENDS[i + 1]
        c = SHORTLIST + i - 1
        o_ref[:, l:r] = (lp[0][:, c:c + 1] + lp[i][:, 0:r - l]).astype(od)


def adaptive_nll_kernel(h_ref, y_ref, w_ref, b_ref, o_ref):
    """labels path: per-row negative log-likelihood only ([tile, 1] output)."""
    logits = jnp.dot(h_ref[...], w_ref[...],
                     preferred_element_type=jnp.float32) + b_ref[...]

    # Per-segment log-sum-exp, [tile, 1] each.
    lse = []
    for g in range(N_SEG):
        s = logits[:, g * SEG_PAD:(g + 1) * SEG_PAD]
        m = jnp.max(s, axis=-1, keepdims=True)
        lse.append(m + jnp.log(jnp.sum(jnp.exp(s - m), axis=-1, keepdims=True)))

    y = y_ref[...]                                     # [tile, 1] int32
    # Cluster index per row: 0 = shortlist, i >= 1 = tail cluster i.
    c = jnp.zeros_like(y)
    for i in range(1, N_SEG):
        c = c + (y >= CUTOFF_ENDS[i]).astype(y.dtype)
    # Start-of-cluster offset per row (CUTOFF_ENDS[c]).
    seg_start = jnp.zeros_like(y)
    for i in range(1, N_SEG):
        seg_start = jnp.where(c == i, CUTOFF_ENDS[i], seg_start)

    lanes = jax.lax.broadcasted_iota(jnp.int32, logits.shape, 1)
    # Column of the target token in the padded layout, and the head-cluster
    # column (only meaningful for tail rows).  One-hot masks + lane reduce.
    col_target = c * SEG_PAD + (y - seg_start)
    col_cluster = SHORTLIST + c - 1
    target_logit = jnp.sum(logits * (lanes == col_target).astype(jnp.float32),
                           axis=-1, keepdims=True)
    cluster_logit = jnp.sum(logits * (lanes == col_cluster).astype(jnp.float32),
                            axis=-1, keepdims=True)

    lse_tgt = lse[0]
    for i in range(1, N_SEG):
        lse_tgt = jnp.where(c == i, lse[i], lse_tgt)
    in_tail = (c > 0).astype(jnp.float32)
    logprob = (target_logit - lse_tgt) + in_tail * (cluster_logit - lse[0])

    # Rows whose label is outside [0, n_token) (e.g. ignore_index) get 0,
    # matching the PyTorch adaptive branch which never writes them.
    valid = (y >= 0) & (y < N_TOKEN)
    o_ref[...] = jnp.where(valid, -logprob, 0.0).astype(o_ref.dtype)


# --------------------------------------------------------------------------
# Host-side helpers / wrappers
# --------------------------------------------------------------------------
def _fold_params(params):
    """Fold projections into weights and pad every segment to 128 lanes.

    params[i] = (proj_i [d_proj, d_emb_i], weight_i [K_i, d_emb_i], bias_i).
    Returns (w_pad [d_proj, TOTAL_PAD] f32, b_pad [1, TOTAL_PAD] f32).
    Note: W_eff = proj @ w.T re-associates the two matmuls of the PyTorch
    reference (intentional; tolerances account for it).
    """
    w_cols, b_cols = [], []
    for i, (p, w, b) in enumerate(params):
        w_eff = p.astype(jnp.float32) @ w.astype(jnp.float32).T
        b_eff = jnp.reshape(b, (1, -1)).astype(jnp.float32)
        k = w_eff.shape[1]
        assert k == SEG_REAL[i] and k <= SEG_PAD
        w_cols.append(jnp.pad(w_eff, ((0, 0), (0, SEG_PAD - k))))
        b_cols.append(jnp.pad(b_eff, ((0, 0), (0, SEG_PAD - k)),
                              constant_values=NEG_PAD))
    return jnp.concatenate(w_cols, axis=1), jnp.concatenate(b_cols, axis=1)


def _plan_rows(n, tile_request):
    """Pick (n_pad, tile, num_blocks): pad rows only to a multiple of 8,
    re-balance the tile so padding waste stays below one sublane group per
    block, and keep >= 2 grid steps whenever there are >= 16 rows so both
    v7x TensorCores receive work."""
    n8 = _round_up(max(n, 8), 8)
    tile = max(8, min(_round_up(tile_request, 8), n8))
    num_blocks = -(-n8 // tile)
    if num_blocks < 2 and n8 >= 16:
        num_blocks = 2
    tile = _round_up(-(-n8 // num_blocks), 8)
    return tile * num_blocks, tile, num_blocks


def projected_adaptive_log_softmax(hidden, params, *, tile=2048, out_dtype=None):
    """labels=None forward: [N, n_token] log-probabilities.

    hidden: [..., d_proj]; internal math is always f32 (keep it that way on
    v5e).  out_dtype controls only the stored log-probs (default: hidden's
    dtype); bf16 halves output HBM bytes on the mem-bound v5e path.
    """
    in_dtype = hidden.dtype
    hidden = hidden.reshape(-1, hidden.shape[-1]).astype(jnp.float32)
    N, d_proj = hidden.shape
    assert d_proj == D_PROJ
    out_dtype = in_dtype if out_dtype is None else jnp.dtype(out_dtype)

    w_pad, b_pad = _fold_params(params)
    n_pad, tile, num_blocks = _plan_rows(N, tile)
    if n_pad != N:
        hidden = jnp.pad(hidden, ((0, n_pad - N), (0, 0)))

    out = pl.pallas_call(
        adaptive_logsoftmax_kernel,
        out_shape=jax.ShapeDtypeStruct((n_pad, N_TOKEN), out_dtype),
        grid=(num_blocks,),
        in_specs=[
            pl.BlockSpec((tile, d_proj), lambda i: (i, 0)),
            # Constant index maps: folded params stay VMEM-resident (~50 KiB).
            pl.BlockSpec(w_pad.shape, lambda i: (0, 0)),
            pl.BlockSpec(b_pad.shape, lambda i: (0, 0)),
        ],
        out_specs=pl.BlockSpec((tile, N_TOKEN), lambda i: (i, 0)),
        compiler_params=_COMPILER_PARAMS,
    )(hidden, w_pad, b_pad)
    return out[:N] if n_pad != N else out


def projected_adaptive_nll(hidden, labels, params, *, tile=2048):
    """labels path: per-token NLL in original row order (keep_order=True).

    hidden: [..., seq, d_proj]; labels: [..., seq] int.  Mirrors the PyTorch
    forward's shift: hidden[..., :-1, :] scored against labels[..., 1:].
    """
    h = hidden[..., :-1, :].reshape(-1, hidden.shape[-1]).astype(jnp.float32)
    y = labels[..., 1:].reshape(-1).astype(jnp.int32)
    if h.shape[0] != y.shape[0]:
        raise ValueError("Input and labels should have the same batch size.")
    N, d_proj = h.shape
    assert d_proj == D_PROJ

    w_pad, b_pad = _fold_params(params)
    n_pad, tile, num_blocks = _plan_rows(N, tile)
    if n_pad != N:
        h = jnp.pad(h, ((0, n_pad - N), (0, 0)))
        y = jnp.pad(y, ((0, n_pad - N),))
    y = y.reshape(-1, 1)

    out = pl.pallas_call(
        adaptive_nll_kernel,
        out_shape=jax.ShapeDtypeStruct((n_pad, 1), jnp.float32),
        grid=(num_blocks,),
        in_specs=[
            pl.BlockSpec((tile, d_proj), lambda i: (i, 0)),
            pl.BlockSpec((tile, 1), lambda i: (i, 0)),
            pl.BlockSpec(w_pad.shape, lambda i: (0, 0)),
            pl.BlockSpec(b_pad.shape, lambda i: (0, 0)),
        ],
        out_specs=pl.BlockSpec((tile, 1), lambda i: (i, 0)),
        compiler_params=_COMPILER_PARAMS,
    )(h, y, w_pad, b_pad)
    return out[:N, 0]


# --------------------------------------------------------------------------
# Pure-JAX references (same math as the PyTorch module)
# --------------------------------------------------------------------------
def ref_forward(h, params):
    def logit(h, p, w, b):
        return (h @ p) @ w.T + jnp.reshape(b, (1, -1))
    head_lp = jax.nn.log_softmax(logit(h, *params[0]), axis=1)
    pieces = [head_lp[:, :SHORTLIST]]
    for i in range(1, N_SEG):
        tail_lp = jax.nn.log_softmax(logit(h, *params[i]), axis=1)
        col = SHORTLIST + i - 1
        pieces.append(head_lp[:, col:col + 1] + tail_lp)
    return jnp.concatenate(pieces, axis=1)


def ref_nll(hidden, labels, params):
    h = hidden[..., :-1, :].reshape(-1, hidden.shape[-1])
    y = labels[..., 1:].reshape(-1)
    lp = ref_forward(h, params)
    return -lp[jnp.arange(h.shape[0]), y]


if __name__ == "__main__":
    key = jax.random.PRNGKey(0)
    keys = jax.random.split(key, 16)
    k_iter = iter(keys[1:])

    BSZ, SEQ = 2, 8
    hidden3 = jax.random.normal(keys[0], (BSZ, SEQ, D_PROJ), dtype=jnp.float32)
    hidden = hidden3.reshape(-1, D_PROJ)      # [16, 32]: the labels=None view

    # deterministic parameter init mirroring __init__ (div_val > 1 branch)
    cluster_weight = 0.02 * jax.random.normal(next(k_iter), (N_CLUSTERS, D_EMBED))
    cluster_bias = 0.02 * jax.random.normal(next(k_iter), (N_CLUSTERS,))
    params = []
    for i in range(N_SEG):
        l, r = CUTOFF_ENDS[i], CUTOFF_ENDS[i + 1]
        d_emb_i = D_EMBED // DIV_VAL ** i
        proj_i = 0.02 * jax.random.normal(next(k_iter), (D_PROJ, d_emb_i))
        w_i = 0.02 * jax.random.normal(next(k_iter), (r - l, d_emb_i))
        b_i = 0.02 * jax.random.normal(next(k_iter), (r - l,))
        if i == 0:   # head: append cluster rows (weights[0] = cat([w, cluster_w]))
            w_i = jnp.concatenate([w_i, cluster_weight], axis=0)
            b_i = jnp.concatenate([b_i, cluster_bias], axis=0)
        params.append((proj_i.astype(jnp.float32), w_i.astype(jnp.float32),
                       b_i.reshape(1, -1).astype(jnp.float32)))

    ref = ref_forward(hidden, params)

    # 1) labels=None path (16 rows -> two 8-row grid steps)
    out = jax.block_until_ready(projected_adaptive_log_softmax(hidden, params))
    assert out.shape == (BSZ * SEQ, N_TOKEN)
    np.testing.assert_allclose(np.asarray(out), np.asarray(ref),
                               rtol=1e-4, atol=1e-5)
    np.testing.assert_allclose(np.exp(np.asarray(out)).sum(axis=1), 1.0,
                               atol=1e-4)

    # 2) multi-block grid with a ragged row count (exercises tile re-balancing)
    n_big = 300
    hidden_big = jax.random.normal(next(k_iter), (n_big, D_PROJ),
                                   dtype=jnp.float32)
    out_big = jax.block_until_ready(
        projected_adaptive_log_softmax(hidden_big, params, tile=128))
    np.testing.assert_allclose(np.asarray(out_big),
                               np.asarray(ref_forward(hidden_big, params)),
                               rtol=1e-4, atol=1e-5)

    # 3) bf16 output store (mem-bound v5e option); internal math stays f32
    out_bf16 = jax.block_until_ready(
        projected_adaptive_log_softmax(hidden, params, out_dtype=jnp.bfloat16))
    np.testing.assert_allclose(np.asarray(out_bf16.astype(jnp.float32)),
                               np.asarray(ref), rtol=0, atol=5e-2)

    # 4) fused labels/NLL path (keep_order=True ordering)
    labels = jax.random.randint(next(k_iter), (BSZ, SEQ), 0, N_TOKEN,
                                dtype=jnp.int32)
    nll = jax.block_until_ready(projected_adaptive_nll(hidden3, labels, params))
    assert nll.shape == (BSZ * (SEQ - 1),)
    np.testing.assert_allclose(np.asarray(nll),
                               np.asarray(ref_nll(hidden3, labels, params)),
                               rtol=1e-4, atol=1e-5)

    print("KERNEL_OK")
</pallas_src>

<mosaic_0001>
module attributes {stable_mosaic.version = 11 : i64} {
  func.func @adaptive_logsoftmax_kernel(%arg0: i32, %arg1: memref<8x32xf32, #tpu.memory_space<vmem>>, %arg2: memref<32x384xf32, #tpu.memory_space<vmem>>, %arg3: memref<1x384xf32, #tpu.memory_space<vmem>>, %arg4: memref<8x160xf32, #tpu.memory_space<vmem>>) attributes {dimension_semantics = [#tpu.dimension_semantics<parallel>], iteration_bounds = array<i64: 2>, scalar_prefetch = 0 : i64, scratch_operands = 0 : i64, tpu.core_type = #tpu.core_type<tc>, window_params = [{transform_indices = @transform_0, window_bounds = array<i64: 8, 32>}, {pipeline_mode = #tpu.pipeline_mode<synchronous>, transform_indices = @transform_1, window_bounds = array<i64: 32, 384>}, {pipeline_mode = #tpu.pipeline_mode<synchronous>, transform_indices = @transform_2, window_bounds = array<i64: 1, 384>}, {transform_indices = @transform_3, window_bounds = array<i64: 8, 160>}]} {
    %c0 = arith.constant 0 : index
    %c0_0 = arith.constant 0 : index
    %0 = vector.load %arg1[%c0, %c0_0] : memref<8x32xf32, #tpu.memory_space<vmem>>, vector<8x32xf32>
    %c0_1 = arith.constant 0 : index
    %c0_2 = arith.constant 0 : index
    %1 = vector.load %arg2[%c0_1, %c0_2] : memref<32x384xf32, #tpu.memory_space<vmem>>, vector<32x384xf32>
    %cst = arith.constant dense<0.000000e+00> : vector<8x384xf32>
    %2 = tpu.matmul %0, %1, %cst {dimension_numbers = #tpu.dot_dimension_numbers<[1], [0], [0], [1], [0, 0, 1, 1], [], []>} : vector<8x32xf32>, vector<32x384xf32>, vector<8x384xf32> -> vector<8x384xf32>
    %c0_3 = arith.constant 0 : index
    %c0_4 = arith.constant 0 : index
    %3 = vector.load %arg3[%c0_3, %c0_4] : memref<1x384xf32, #tpu.memory_space<vmem>>, vector<1x384xf32>
    %4 = vector.broadcast %3 : vector<1x384xf32> to vector<8x384xf32>
    %5 = arith.addf %2, %4 : vector<8x384xf32>
    %6 = vector.extract_strided_slice %5 {offsets = [0, 0], sizes = [8, 128], strides = [1, 1]} : vector<8x384xf32> to vector<8x128xf32>
    %cst_5 = arith.constant dense<0xFF800000> : vector<8xf32>
    %7 = vector.multi_reduction <maximumf>, %6, %cst_5 [1] : vector<8x128xf32> to vector<8xf32>
    %8 = vector.shape_cast %7 : vector<8xf32> to vector<8x1xf32>
    %9 = vector.broadcast %8 : vector<8x1xf32> to vector<8x128xf32>
    %10 = arith.subf %6, %9 : vector<8x128xf32>
    %11 = math.exp %10 : vector<8x128xf32>
    %cst_6 = arith.constant dense<0.000000e+00> : vector<8xf32>
    %12 = vector.multi_reduction <add>, %11, %cst_6 [1] : vector<8x128xf32> to vector<8xf32>
    %13 = vector.shape_cast %12 : vector<8xf32> to vector<8x1xf32>
    %14 = math.log %13 : vector<8x1xf32>
    %15 = vector.broadcast %14 : vector<8x1xf32> to vector<8x128xf32>
    %16 = arith.subf %10, %15 : vector<8x128xf32>
    %17 = vector.extract_strided_slice %5 {offsets = [0, 128], sizes = [8, 128], strides = [1, 1]} : vector<8x384xf32> to vector<8x128xf32>
    %cst_7 = arith.constant dense<0xFF800000> : vector<8xf32>
    %18 = vector.multi_reduction <maximumf>, %17, %cst_7 [1] : vector<8x128xf32> to vector<8xf32>
    %19 = vector.shape_cast %18 : vector<8xf32> to vector<8x1xf32>
    %20 = vector.broadcast %19 : vector<8x1xf32> to vector<8x128xf32>
    %21 = arith.subf %17, %20 : vector<8x128xf32>
    %22 = math.exp %21 : vector<8x128xf32>
    %cst_8 = arith.constant dense<0.000000e+00> : vector<8xf32>
    %23 = vector.multi_reduction <add>, %22, %cst_8 [1] : vector<8x128xf32> to vector<8xf32>
    %24 = vector.shape_cast %23 : vector<8xf32> to vector<8x1xf32>
    %25 = math.log %24 : vector<8x1xf32>
    %26 = vector.broadcast %25 : vector<8x1xf32> to vector<8x128xf32>
    %27 = arith.subf %21, %26 : vector<8x128xf32>
    %28 = vector.extract_strided_slice %5 {offsets = [0, 256], sizes = [8, 128], strides = [1, 1]} : vector<8x384xf32> to vector<8x128xf32>
    %cst_9 = arith.constant dense<0xFF800000> : vector<8xf32>
    %29 = vector.multi_reduction <maximumf>, %28, %cst_9 [1] : vector<8x128xf32> to vector<8xf32>
    %30 = vector.shape_cast %29 : vector<8xf32> to vector<8x1xf32>
    %31 = vector.broadcast %30 : vector<8x1xf32> to vector<8x128xf32>
    %32 = arith.subf %28, %31 : vector<8x128xf32>
    %33 = math.exp %32 : vector<8x128xf32>
    %cst_10 = arith.constant dense<0.000000e+00> : vector<8xf32>
    %34 = vector.multi_reduction <add>, %33, %cst_10 [1] : vector<8x128xf32> to vector<8xf32>
    %35 = vector.shape_cast %34 : vector<8xf32> to vector<8x1xf32>
    %36 = math.log %35 : vector<8x1xf32>
    %37 = vector.broadcast %36 : vector<8x1xf32> to vector<8x128xf32>
    %38 = arith.subf %32, %37 : vector<8x128xf32>
    %39 = vector.extract_strided_slice %16 {offsets = [0, 0], sizes = [8, 64], strides = [1, 1]} : vector<8x128xf32> to vector<8x64xf32>
    %c0_11 = arith.constant 0 : index
    %c0_12 = arith.constant 0 : index
    %40 = vector.load %arg4[%c0_11, %c0_12] : memref<8x160xf32, #tpu.memory_space<vmem>>, vector<8x64xf32>
    tpu.vector_store %arg4[%c0_11, %c0_12], %39 {strides = array<i32>} : memref<8x160xf32, #tpu.memory_space<vmem>>, vector<8x64xf32>,
    %41 = vector.extract_strided_slice %16 {offsets = [0, 64], sizes = [8, 1], strides = [1, 1]} : vector<8x128xf32> to vector<8x1xf32>
    %42 = vector.extract_strided_slice %27 {offsets = [0, 0], sizes = [8, 64], strides = [1, 1]} : vector<8x128xf32> to vector<8x64xf32>
    %43 = vector.broadcast %41 : vector<8x1xf32> to vector<8x64xf32>
    %44 = arith.addf %43, %42 : vector<8x64xf32>
    %c0_13 = arith.constant 0 : index
    %c64 = arith.constant 64 : index
    %45 = vector.load %arg4[%c0_13, %c64] : memref<8x160xf32, #tpu.memory_space<vmem>>, vector<8x64xf32>
    tpu.vector_store %arg4[%c0_13, %c64], %44 {strides = array<i32>} : memref<8x160xf32, #tpu.memory_space<vmem>>, vector<8x64xf32>,
    %46 = vector.extract_strided_slice %16 {offsets = [0, 65], sizes = [8, 1], strides = [1, 1]} : vector<8x128xf32> to vector<8x1xf32>
    %47 = vector.extract_strided_slice %38 {offsets = [0, 0], sizes = [8, 32], strides = [1, 1]} : vector<8x128xf32> to vector<8x32xf32>
    %48 = vector.broadcast %46 : vector<8x1xf32> to vector<8x32xf32>
    %49 = arith.addf %48, %47 : vector<8x32xf32>
    %c0_14 = arith.constant 0 : index
    %c128 = arith.constant 128 : index
    %50 = vector.load %arg4[%c0_14, %c128] : memref<8x160xf32, #tpu.memory_space<vmem>>, vector<8x32xf32>
    tpu.vector_store %arg4[%c0_14, %c128], %49 {strides = array<i32>} : memref<8x160xf32, #tpu.memory_space<vmem>>, vector<8x32xf32>,
    return
  }
  func.func @transform_0(%arg0: i32) -> (i32, i32) {
    %c0_i32 = arith.constant 0 : i32
    %c0_i32_0 = arith.constant 0 : i32
    return %arg0, %c0_i32 : i32, i32
  }
  func.func @transform_1(%arg0: i32) -> (i32, i32) {
    %c0_i32 = arith.constant 0 : i32
    %c0_i32_0 = arith.constant 0 : i32
    %c0_i32_1 = arith.constant 0 : i32
    return %c0_i32, %c0_i32_0 : i32, i32
  }
  func.func @transform_2(%arg0: i32) -> (i32, i32) {
    %c0_i32 = arith.constant 0 : i32
    %c0_i32_0 = arith.constant 0 : i32
    %c0_i32_1 = arith.constant 0 : i32
    return %c0_i32, %c0_i32_0 : i32, i32
  }
  func.func @transform_3(%arg0: i32) -> (i32, i32) {
    %c0_i32 = arith.constant 0 : i32
    %c0_i32_0 = arith.constant 0 : i32
    return %arg0, %c0_i32 : i32, i32
  }
}

</mosaic_0001>

<bundles_post_ra>
// kernel: tpu_custom_call.1
= control target key start
LH: loop header
LB: loop body
LE: loop exit
PB: predicated region body
PF: predicated region fallthrough
CT: control target
= control target key end

     0   :  { %8 = vsyncpa [#allocation3], 0  ;;  %s1015_s0 = inlined_call_operand.hbm [shape: f32[16,32], index: 0, kind: input, shape index: {}]   ;;  %s1016_s1 = inlined_call_operand.hbm [shape: f32[32,384], index: 1, kind: input, shape index: {}]   ;;  %s1017_s2 = inlined_call_operand.vmem [shape: f32[1,384], index: 2, kind: input, shape index: {}]   ;;  %s1018_s3 = inlined_call_operand.hbm [shape: f32[16,160], index: 3, kind: output, shape index: {}]  }
   0x1   :  { %10 = vsyncpa [#allocation3 + $0x1], 0 }
   0x2   :  { %11 = vsyncpa [#allocation6], 0 }
   0x3   :  { %12 = vsyncpa [#allocation4], 0 }
   0x4   :  { %14 = vsyncpa [#allocation4 + $0x1], 0  ;;  %s809_s12 = smov 0   ;;  %s811_s13 = smov 0  }
   0x5   :  { %s813_s14 = smov 0   ;;  %s815_s15 = smov 0  }
   0x6 LB: > { %s830_s16 = sadd.s32 4294967295, %s776_s15   ;;  %s521_s17 = sadd.s32 4294967294, %s776_s15   ;;  %s776_s15 = sphi %s815_s15, %s1038_s15   ;;  %s772_s14 = sphi %s813_s14, %s1037_s14   ;;  %s768_s13 = sphi %s811_s13, %s1036_s13   ;;  %s764_s12 = sphi %s809_s12, %s1035_s12  }
   0x7   : > { %p40_p0 = scmp.ne.s32.totalorder %s768_s13, %s764_s12  ;;  %p1019_p1 = scmp.eq.s32.totalorder %s830_s16, 0 }
   0x8   : > { %p112_p3 = scmp.eq.s32.totalorder %s521_s17, 1  ;;  %p522_p5 = scmp.ge.s32.totalorder %s776_s15, 1 }
   0x9   : > { %p839_p4 = por %p1019_p1, %p40_p0  ;;  %p119_p7 = scmp.lt.s32.totalorder %s776_s15, 3 }
   0xa   : > { %p844_p6 = por %p112_p3, %p40_p0  ;;  %s778_s21 = smov [#allocation5]  }
   0xb   : > { %s1022_s18 = scalar_select %p839_p4, 1, 0 }
   0xc   : > { %s1023_s19 = scalar_select %p844_p6, 1, 0 }
   0xd   : > { %p849_p8 = pnand %p522_p5, %p119_p7  ;;  %s131_s22 = sshll.u32 %s778_s21, 4  ;;  %s853_s22 = int_to_ptr.vmem [resolvable:$true] %s131_s22 }
   0xe   : > { %s865_s24 = sadd.s32 1, %s776_s15   ;;  %s27_s25 = sadd.s32 1, %s772_s14 }
   0xf   : > { %s1024_s20 = scalar_select %p849_p8, 1, 0 }
  0x10   : > { %p577_p9 = pneg %p849_p8  ;;  %s24_s26 = ssub.s32 %s776_s15, %s865_s24 }
  0x11   : > { %s648_s29 = scalar_lea.hbm %s1016_s1, 1536 }
  0x12   : > { %p860_p11 = pnand %p577_p9, %p1019_p1  ;;  %p649_p12 = scmp.ne.s32.totalorder %s1016_s1, %s648_s29 }
  0x13   : > { %p655_p5 = scmp.lt.u32.totalorder %s648_s29, %s1016_s1 }
  0x14   : > { %p650_p13 = pneg %p860_p11 }
  0x16   : > { %p651_p0 = pnand %p650_p13, %p649_p12 }
  0x18   : > { %p652_p3 = pneg %p651_p0 }
  0x1a   : > { %p657_p7 = pnand %p655_p5, %p652_p3 }
  0x1c   : > { %660 = shalt.err (!%p657_p7)
}
  0x1d   : > { %s661_s7 = scalar_lea.vmem %s853_s22, 1536  ;;  %p669_p2 = scmp.lt.s32.totalorder %s853_s22, %s853_s22 }
  0x1e   : > { %p662_p9 = scmp.ne.s32.totalorder %s853_s22, %s661_s7  ;;  %p670_p6 = scmp.lt.s32.totalorder %s661_s7, %s661_s7 }
  0x20   : > { %p664_p10 = pnand %p662_p9, %p650_p13  ;;  %p671_p4 = por %p670_p6, %p669_p2 }
  0x22   : > { %p665_p1 = pneg %p664_p10 }
  0x24   : > { %p672_p8 = pnand %p671_p4, %p665_p1 }
  0x26   : > { %675 = shalt.err (!%p672_p8)
}
  0x27   : > { %s779_s8 = smov 384   ;;  %s780_s9 = smov 24  }
  0x28   : > { %580 = dma.hbm_to_vmem [thread:$0]  (!%p860_p11), %s1016_s1, 1536, %s853_s22, [#allocation6], %s779_s8, %s779_s8, %s780_s9  }
  0x29   : > { %p25_p2 = scmp.eq.s32.totalorder %s24_s26, 0  ;;  %p34_p1 = scmp.ne.s32.totalorder %s772_s14, %s768_s13 }
  0x2a   : > { %p35_p4 = scmp.eq.s32.totalorder %s776_s15, 0  ;;  %p590_p6 = scmp.lt.s32.totalorder %s776_s15, 2 }
  0x2b   : > { %s896_s17 = scalar_select %p25_p2, %s772_s14, %s27_s25  }
  0x2c   : > { %p36_p8 = por %p35_p4, %p34_p1  ;;  %p1026_p10 = scmp.eq.s32.totalorder %s830_s16, 1 }
  0x2d   : > { %s148_s27 = sand.u32 1, %s772_s14   ;;  %s526_s28 = sshll.u32 %s776_s15, 7 }
  0x2e   : > { %p900_p12 = por %p1026_p10, %p34_p1  ;;  %s525_s29 = sshll.u32 %s148_s27, 3 }
  0x2f   : > { %s909_s4 = scalar_lea.hbm %s1015_s0, %s526_s28  ;;  %s152_s22 = scalar_lea.vmem [#allocation2], %s525_s29 }
  0x30   : > { %s159_s25 = sshll.u32 %s152_s22, 4  ;;  %p911_p11 = pnand %p590_p6, %p36_p8  ;;  %s915_s25 = int_to_ptr.vmem [resolvable:$true] %s159_s25 }
  0x31   : > { %s149_s5 = scalar_lea.sflag [#allocation3], %s148_s27  ;;  %s676_s6 = scalar_lea.hbm %s909_s4, 128 }
  0x32   : > { %p677_p13 = scmp.ne.s32.totalorder %s909_s4, %s676_s6  ;;  %p678_p0 = pneg %p911_p11 }
  0x33   : > { %s681_s9 = scalar_lea.hbm %s1015_s0, 256  ;;  %p682_p7 = scmp.lt.u32.totalorder %s909_s4, %s1015_s0 }
  0x34   : > { %p679_p3 = pnand %p678_p0, %p677_p13  ;;  %p683_p9 = scmp.lt.u32.totalorder %s681_s9, %s676_s6 }
  0x35   : > { %p685_p1 = scmp.lt.u32.totalorder %s676_s6, %s909_s4 }
  0x36   : > { %p680_p5 = pneg %p679_p3  ;;  %p684_p2 = por %p683_p9, %p682_p7 }
  0x38   : > { %p686_p4 = por %p685_p1, %p684_p2 }
  0x3a   : > { %p687_p6 = pnand %p686_p4, %p680_p5 }
  0x3c   : > { %690 = shalt.err (!%p687_p6)
}
  0x3d   : > { %s691_s27 = scalar_lea.vmem %s915_s25, 128  ;;  %s781_s28 = smov [#allocation2]  }
  0x3e   : > { %p692_p8 = scmp.ne.s32.totalorder %s915_s25, %s691_s27  ;;  %s696_s29 = sshll.u32 %s781_s28, 4  ;;  %s697_s29 = int_to_ptr.vmem [resolvable:$false] %s696_s29 }
  0x3f   : > { %s698_s23 = scalar_lea.vmem %s697_s29, 256  ;;  %p699_p3 = scmp.lt.s32.totalorder %s915_s25, %s697_s29 }
  0x40   : > { %p694_p10 = pnand %p692_p8, %p678_p0  ;;  %p700_p7 = scmp.lt.s32.totalorder %s698_s23, %s691_s27 }
  0x42   : > { %p695_p13 = pneg %p694_p10  ;;  %p701_p9 = por %p700_p7, %p699_p3 }
  0x44   : > { %p702_p2 = pnand %p701_p9, %p695_p13 }
  0x46   : > { %705 = shalt.err (!%p702_p2)
}
  0x47   : > { %584 = dma.hbm_to_vmem [thread:$0]  (!%p911_p11), %s909_s4, 128, %s915_s25, %s149_s5  }
  0x48   : > { %p1029_p5 = scmp.ne.s32.totalorder %s1024_s20, 0 }
  0x49   : > { %s945_s30 = sand.u32 (!%p1029_p5), 1, %s768_s13   ;;  %p1030_p0 = scmp.ne.s32.totalorder (!%p1029_p5), %s1022_s18, 0 }
  0x4a   : > { %168 = sbr.rel (%p1029_p5) target bundleno = 883 (0x373), region = 32  ;;  %s528_s22 = sshll.u32 (!%p1029_p5), %s945_s30, 3 }
  0x4b   : > { %s171_s6 = scalar_lea.sflag (!%p1029_p5), [#allocation3], %s945_s30  ;;  %s949_s7 = scalar_lea.vmem (!%p1029_p5), [#allocation2], %s528_s22 }
  0x51   : > { %751 = dma.done.wait (%p1030_p0), %s171_s6, 128  }
  0x52   : > { %753 = vsyncadd (%p1030_p0), %s171_s6, 4294967168  ;;  %p1031_p11 = scmp.eq.s32.totalorder %s830_s16, 0 }
  0x54   : > { %755 = dma.done.wait (%p1031_p11), [#allocation6], 1536   ;;  %p1032_p1 = pmov %p1031_p11 }
  0x55   : > { %v782_v0 = vmov 0.0   ;;  %v783_v1 = vmov 0.0|0.0   ;;  %vm784_vm0 = vmmov 0   ;;  %v203_v2 = vld [vmem:[#allocation5 + $0x8] sm:$0xff]  ;;  %v206_v3 = vld [vmem:[#allocation5 + $0x20] sm:$0xff]  ;;  %v205_v6 = vld [vmem:[#allocation5 + $0x18] sm:$0xff]  ;;  %v216_v21 = vlaneseq }
  0x56   : > { %757 = vsyncadd (%p1032_p1), [#allocation6], 4294965760  ;;  %299 = vmatprep.mubr.f32.mxu0 %v782_v0  ;;  %563 = vmatprep.subr.bf16.mxu1 %v783_v1  ;;  %v202_v4 = vld [vmem:[#allocation5] sm:$0xff]  ;;  %v555_v5 = vpack.c.bf16 %v206_v3, %v203_v2  ;;  %v209_v7 = vld [vmem:[#allocation5 + $0x38] sm:$0xff]  ;;  %vm231_vm1 = vcmask 261120   ;;  %v785_v45 = vmov 64  }
  0x57   : > { %552 = vmatprep.mubr.msk.f32.mxu1 %vm784_vm0, %v782_v0  ;;  %v212_v8 = vld [vmem:[#allocation5 + $0x50] sm:$0xff]  ;;  %v557_v9 = vpack.c.bf16 %v205_v6, %v202_v4  ;;  %v211_v12 = vld [vmem:[#allocation5 + $0x48] sm:$0xff]  ;;  %v210_v15 = vld [vmem:[#allocation5 + $0x40] sm:$0xff]  ;;  %v217_v22 = vshrl.u32 %v216_v21, 7  ;;  %634 = vset.pattern.permute.xlu1 %v785_v45  ;;  %v786_v46 = vmov 65   ;;  %s530_s4 = sshll.u32 %s945_s30, 4 }
  0x58   : > { %v559_v10 = vpack.c.bf16 %v212_v8, %v209_v7  ;;  %v208_v11 = vld [vmem:[#allocation5 + $0x30] sm:$0xff]  ;;  %556 = vmatprep.subr.bf16.mxu0 %v555_v5  ;;  %v207_v14 = vld [vmem:[#allocation5 + $0x28] sm:$0xff]  ;;  %v213_v18 = vld [vmem:[#allocation5 + $0x58] sm:$0xff]  ;;  %635 = vset.pattern.permute.xlu0 %v786_v46  ;;  %vm406_vm2 = vcmask 523264   ;;  %s200_s25 = scalar_lea.vmem [#allocation7], %s530_s4  ;;  %s787_s26 = smov 64  }
  0x59   : > { %v204_v13 = vld [vmem:[#allocation5 + $0x10] sm:$0xff]  ;;  %558 = vmatpush1.bf16.msra.mxu0 %v557_v9  ;;  %v561_v16 = vpack.c.bf16 %v211_v12, %v208_v11  ;;  %v567_v19 = vpack.c.bf16 %v213_v18, %v210_v15  ;;  %v218_v23 = vsub.s32 0, %v217_v22  ;;  %v222_v26 = vsub.s32 1, %v217_v22  ;;  %s538_s5 = sshll.u32 %s830_s16, 8  ;;  %s441_s8 = sshll.u32 %s200_s25, 4  ;;  %s973_s8 = int_to_ptr.vmem [resolvable:$true] %s441_s8 }
  0x5a   : > { %v564_v17 = vpack.c.bf16 %v207_v14, %v204_v13  ;;  %560 = vmatprep.subr.bf16.mxu0 %v559_v10  ;;  %v201_v20 = vld [vmem:[%s949_s7] sm:$0xff]  ;;  %v226_v40 = vsub.s32 2, %v217_v22  ;;  %vm418_vm3 = vcmask 1048064   ;;  %s971_s11 = scalar_lea.hbm %s1018_s3, %s538_s5  ;;  %s427_s27 = scalar_lea.sflag [#allocation4], %s945_s30 }
  0x5b   : > { %v214_v24 = vld [vmem:[%s1017_s2] sm:$0x7]  ;;  %s706_s28 = scalar_lea.vmem %s973_s8, 256  ;;  %s788_s16 = smov [#allocation7]  }
  0x5c   : > { %565 = vmatpush3.bf16.msra.mxu1 %v564_v17  ;;  %v219_v25 = vrot.slane %v214_v24, %v218_v23  ;;  %v223_v29 = vrot.slane %v214_v24, %v222_v26  ;;  %v227_v41 = vrot.slane %v214_v24, %v226_v40  ;;  %p707_p4 = scmp.ne.s32.totalorder %s973_s8, %s706_s28  ;;  %s710_s29 = sshll.u32 %s788_s16, 4  ;;  %s711_s29 = int_to_ptr.vmem [resolvable:$false] %s710_s29 }
  0x5d   : > { %566 = vmatprep.subr.bf16.mxu1 %v783_v1  ;;  %562 = vmatpush1.bf16.msra.mxu0 %v561_v16  ;;  %s712_s23 = scalar_lea.vmem %s711_s29, 512  ;;  %p713_p10 = scmp.lt.s32.totalorder %s973_s8, %s711_s29 }
  0x5e   : > { %p708_p6 = pnand %p707_p4, %p900_p12  ;;  %p714_p13 = scmp.lt.s32.totalorder %s712_s23, %s706_s28 }
  0x60   : > { %568 = vmatpush3.bf16.msra.mxu1 %v567_v19  ;;  %531 = vmatmul.mubr.msk.f32.vlgmr.msra.gmra.mrb[0].mxu0 %vm231_vm1, %v201_v20  ;;  %p709_p8 = pneg %p708_p6  ;;  %p715_p3 = por %p714_p13, %p713_p10 }
  0x62   : > { %p716_p7 = pnand %p715_p3, %p709_p8 }
  0x63   : > { %553 = vmatmul.mubr.msk.f32.vlgmr.msra.gmra.mrb[0].mxu1 %vm231_vm1, %v201_v20 }
 0x133   : > { %v301_v27 = vpop.f32.mrb[0].mxu0 }
 0x134   : > { %v302_v28 = vadd.f32 %v301_v27, %v219_v25  ;;  %v303_v30 = vpop.f32.mrb[1].mxu0 }
 0x135   : > { %v304_v31 = vadd.f32 %v303_v30, %v223_v29 }
 0x136   : > { %376 = vmax.xlane.f32.xlu0 %v302_v28  ;;  %v372_v32 = vpop.f32.mrb[0].mxu1 }
 0x137   : > { %v554_v33 = vpop.f32.mrb[1].mxu1  ;;  %v373_v43 = vadd.f32 %v372_v32, %v227_v41 }
 0x13a   : > { %386 = vmax.xlane.f32.xlu0 %v304_v31 }
 0x1c3   : > { %v377_v34 = vpop.xlane.xlu0 %376 }
 0x1c4   : > { %v378_v35 = vsub.f32 %v302_v28, %v377_v34 }
 0x1c6   : > { %v379_v36 = vmul.f32 1.442695, %v378_v35 }
 0x1c7   : > { %v387_v37 = vpop.xlane.xlu0 %386 }
 0x1c8   : > { %v388_v38 = vsub.f32 %v304_v31, %v387_v37  ;;  %636 = vpow2.f32 %v379_v36 }
 0x1ca   : > { %v389_v39 = vmul.f32 1.442695, %v388_v38 }
 0x1cc   : > { %638 = vpow2.f32 %v389_v39 }
 0x1d2   : > { %v637_v42 = vpop.eup %636 }
 0x1d3   : > { %381 = vadd.xlane.f32.xlu1 %v637_v42 }
 0x1d6   : > { %v639_v44 = vpop.eup %638 }
 0x1d7   : > { %396 = vmax.xlane.f32.xlu1 %v373_v43  ;;  %391 = vadd.xlane.f32.xlu0 %v639_v44 }
 0x260   : > { %v382_v47 = vpop.xlane.xlu1 %381 }
 0x261   : > { %640 = vlog2.f32 %v382_v47 }
 0x264   : > { %v397_v48 = vpop.xlane.xlu1 %396  ;;  %v392_v55 = vpop.xlane.xlu0 %391 }
 0x265   : > { %v398_v49 = vsub.f32 %v373_v43, %v397_v48 }
 0x267   : > { %v399_v50 = vmul.f32 1.442695, %v398_v49 }
 0x269   : > { %642 = vpow2.f32 %v399_v50 }
 0x26a   : > { %644 = vlog2.f32 %v392_v55 }
 0x26b   : > { %v641_v51 = vpop.eup %640 }
 0x26c   : > { %v384_v52 = vmul.f32 0.6931472, %v641_v51 }
 0x26e   : > { %v385_v53 = vsub.f32 %v378_v35, %v384_v52 }
 0x270   : > { %410 = vperm.xlu1 %634, %v385_v53   ;;  %407 = vst.msk [vmem:[%s200_s25] sm:$0xff] %vm406_vm2, %v385_v53 }
 0x273   : > { %v643_v54 = vpop.eup %642 }
 0x274   : > { %401 = vadd.xlane.f32.xlu0 %v643_v54  ;;  %v645_v56 = vpop.eup %644 }
 0x275   : > { %v394_v57 = vmul.f32 0.6931472, %v645_v56 }
 0x277   : > { %v395_v58 = vsub.f32 %v388_v38, %v394_v57 }
 0x28a   : > { %421 = vperm.xlu0 %635, %v385_v53  }
 0x2ef   : > { %v411_v59 = vpop.permute.xlu1 %410 }
 0x2f0   : > { %v413_v60 = vadd.f32 %v411_v59, %v395_v58 }
 0x2f2   : > { %415 = vrot.lane.b32.xlu1 %v413_v60, %s787_s26 }
 0x301   : > { %v402_v61 = vpop.xlane.xlu0 %401 }
 0x302   : > { %646 = vlog2.f32 %v402_v61 }
 0x309   : > { %v422_v1 = vpop.permute.xlu0 %421 }
 0x30c   : > { %v647_v62 = vpop.eup %646 }
 0x30d   : > { %v404_v63 = vmul.f32 0.6931472, %v647_v62 }
 0x30f   : > { %v405_v0 = vsub.f32 %v398_v49, %v404_v63 }
 0x311   : > { %v424_v2 = vadd.f32 %v422_v1, %v405_v0 }
 0x313   : > { %425 = vst.msk [vmem:[%s200_s25 + $0x8] sm:$0xff] %vm231_vm1, %v424_v2 }
 0x364   : > { %v416_v3 = vpop.permute.xlu1 %415 }
 0x365   : > { %419 = vst.msk [vmem:[%s200_s25] sm:$0xff] %vm418_vm3, %v416_v3 }
 0x366   : > { %719 = shalt.err (!%p716_p7)
}
 0x367   : > { %s720_s30 = scalar_lea.hbm %s971_s11, 256  ;;  %s724_s7 = scalar_lea.hbm %s1018_s3, 512 }
 0x368   : > { %p721_p9 = scmp.ne.s32.totalorder %s971_s11, %s720_s30  ;;  %p725_p0 = scmp.lt.u32.totalorder %s971_s11, %s1018_s3 }
 0x369   : > { %p726_p11 = scmp.lt.u32.totalorder %s724_s7, %s720_s30  ;;  %p728_p4 = scmp.lt.u32.totalorder %s720_s30, %s971_s11 }
 0x36a   : > { %p722_p2 = pnand %p721_p9, %p900_p12 }
 0x36b   : > { %p727_p1 = por %p726_p11, %p725_p0 }
 0x36c   : > { %p723_p5 = pneg %p722_p2 }
 0x36d   : > { %p729_p6 = por %p728_p4, %p727_p1 }
 0x36f   : > { %p730_p8 = pnand %p729_p6, %p723_p5 }
 0x371   : > { %733 = shalt.err (!%p730_p8)
}
 0x372   : > { %575 = dma.vmem_to_hbm [thread:$0]  (%p900_p12), %s973_s8, 256, %s971_s11, %s427_s27  }
 0x373 PF: > { %s453_s4 = sand.u32 1, %s764_s12   ;;  %p1033_p10 = scmp.ne.s32.totalorder %s1023_s19, 0 }
 0x374   : > { %p1034_p13 = scmp.ge.s32.totalorder %s776_s15, 2  ;;  %s454_s25 = scalar_lea.sflag [#allocation4], %s453_s4 }
 0x376   : > { %p586_p3 = pnand %p1034_p13, %p1033_p10 }
 0x378   : > { %759 = dma.done.wait (!%p586_p3), %s454_s25, 256  }
 0x379   : > { %761 = vsyncadd (!%p586_p3), %s454_s25, 4294967040  ;;  %p17_p7 = scmp.ge.s32.totalorder %s865_s24, 4   ;;  %s1035_s12 = smov %s768_s13 }
 0x37a   : > { %s1036_s13 = smov %s772_s14  ;;  %s1037_s14 = smov %s896_s17 }
 0x37b   : > { %s1038_s15 = smov %s865_s24  ;;  %19 = sbr.rel (!%p17_p7) target bundleno = 6 (0x6), region = 81 }
 0x382   :  { %459 = vsyncpa [#allocation3], 1 }
 0x383   :  { %461 = vsyncpa [#allocation3 + $0x1], 1 }
 0x384   :  { %462 = vsyncpa [#allocation6], 1 }
 0x385   :  { %463 = vsyncpa [#allocation4], 1 }
 0x386   :  { %465 = vsyncpa [#allocation4 + $0x1], 1 }

</bundles_post_ra>
